<compile_context>
chip_gen: v7x
topology: tpu7x:2x2x1
jax: 0.10.0
libtpu: 0.0.40
codegen_flags: <defaults>
</compile_context>

<pallas_src>
import functools

import jax
import jax.numpy as jnp
from jax import lax
from jax.experimental import pallas as pl
from jax.experimental.pallas import tpu as pltpu


def _nearest_code_kernel(z_ref, cb_ref, out_ref, zaug_ref, *, v_chunk):
    # z_ref:    (D, TILE_T)     f32 -- lane-dense z columns for this (codebook, batch, tile)
    # cb_ref:   (V, D + 1)      f32 -- augmented codebook [cb | -0.5*||cb||^2], resident across (b, t)
    # out_ref:  (1, TILE_T)     i32 -- nearest-code index per column
    # zaug_ref: (D + 1, TILE_T) f32 -- scratch: [z ; ones]
    D, tile_t = z_ref.shape
    V = cb_ref.shape[0]

    # Augmented z tile: the trailing row of ones folds the -0.5*||cb||^2 bias
    # into the matmul itself (no separate (V, TILE_T) VPU pass).
    zaug_ref[pl.ds(0, D), :] = z_ref[...]
    zaug_ref[pl.ds(D, 1), :] = jnp.ones((1, tile_t), jnp.float32)
    zaug = zaug_ref[...]

    n_chunks = V // v_chunk  # wrapper guarantees v_chunk divides V

    best_val = None
    best_idx = None
    for c in range(n_chunks):
        # key[v, n] = cb_v . z_n - 0.5*||cb_v||^2 ; argmax_v key == argmin_v ||z_n - cb_v||^2
        key = jnp.dot(cb_ref[pl.ds(c * v_chunk, v_chunk), :], zaug,
                      preferred_element_type=jnp.float32)            # (VC, TILE_T)  MXU
        cmax = jnp.max(key, axis=0, keepdims=True)                   # (1, TILE_T)
        row = lax.broadcasted_iota(jnp.int32, (v_chunk, 1), 0) + c * v_chunk
        # first occurrence within the chunk (matches torch.argmin tie-break)
        cidx = jnp.min(jnp.where(key >= cmax, row, V), axis=0, keepdims=True)
        if c == 0:
            best_val, best_idx = cmax, cidx
        else:
            better = cmax > best_val          # strict '>' keeps the earliest chunk on ties
            best_val = jnp.where(better, cmax, best_val)
            best_idx = jnp.where(better, cidx, best_idx)

    out_ref[...] = best_idx.astype(jnp.int32)


def _ceil_div(a, b):
    return -(-a // b)


def _choose_v_chunk(V):
    for vc in (512, 256, 128, 64):
        if V % vc == 0:
            return vc
    return V  # fallback: single chunk


def _vmem_caps():
    """Returns (intermediate_budget_bytes, vmem_limit_bytes), per TPU generation."""
    cap = None
    try:
        get_info = getattr(pltpu, "get_tpu_info", None)
        if get_info is not None:
            cap = int(getattr(get_info(), "vmem_capacity_bytes"))
    except Exception:
        cap = None
    if not cap or cap <= 0:
        cap = 64 * 1024 * 1024                       # conservative (v7x-sized) default
    if cap <= 64 * 1024 * 1024:                      # v7x: 64 MiB per TensorCore
        return 24 * 1024 * 1024, 48 * 1024 * 1024
    return 48 * 1024 * 1024, 96 * 1024 * 1024        # v5e / v6e: 128 MiB


def _choose_tile_t(V, D, budget):
    vc = _choose_v_chunk(V)
    # Dominant live VMEM per output column (bytes):
    #   ~4 chunk-sized (VC, .) temporaries (f32 key + select result, pipelined)
    #   + double-buffered z tile (D rows) + zaug scratch (~D+8 rows) + 2x i32 out row
    per_col = 4 * (4 * vc + 2 * D + (D + 8) + 2)
    t = (budget // per_col) // 128 * 128
    return int(max(128, min(t, 4096)))


def extract_codes(quantized_z, codebooks, *, tile_t=None):
    """
    quantized_z: (B, n_codebooks * codebook_dim, T) float
    codebooks:   (n_codebooks, vocab, codebook_dim) float
    returns:     (B, n_codebooks, T) int32   (torch returns int64)
    """
    B, F, T = quantized_z.shape
    n_cb, V, D = codebooks.shape
    if F != n_cb * D:
        raise ValueError(f"Expected {n_cb * D} features ({n_cb}*{D}), got {F}")

    budget, vmem_limit = _vmem_caps()
    if tile_t is None:
        tile_t = _choose_tile_t(V, D, budget)
    if tile_t % 128 != 0:
        raise ValueError("tile_t must be a multiple of 128")

    # Minimize T padding: fix the tile count, then shrink the tile to the
    # smallest 128-multiple that still covers T.
    n_t = _ceil_div(T, tile_t)
    tile_t = _ceil_div(_ceil_div(T, n_t), 128) * 128
    T_pad = n_t * tile_t

    # Free reshape only -- no HBM transpose of z before the kernel.
    z = quantized_z.reshape(B, n_cb, D, T).astype(jnp.float32)
    if T_pad != T:
        z = jnp.pad(z, ((0, 0), (0, 0), (0, 0), (0, T_pad - T)))

    cb = codebooks.astype(jnp.float32)
    cb_aug = jnp.concatenate(
        [cb, -0.5 * jnp.sum(cb * cb, axis=-1, keepdims=True)], axis=-1)  # (n_cb, V, D+1)

    v_chunk = _choose_v_chunk(V)
    kernel = functools.partial(_nearest_code_kernel, v_chunk=v_chunk)

    cost = pl.CostEstimate(
        flops=int(2 * B * n_cb * T_pad * V * (D + 1)),
        transcendentals=0,
        bytes_accessed=int(z.size + cb_aug.size + B * n_cb * T_pad) * 4,
    )

    out = pl.pallas_call(
        kernel,
        out_shape=jax.ShapeDtypeStruct((B, n_cb, 1, T_pad), jnp.int32),
        grid_spec=pltpu.PrefetchScalarGridSpec(
            num_scalar_prefetch=0,
            # codebook axis outermost, T-tile axis last: the (V, D+1) codebook
            # block index is constant across all inner (batch, time) tiles.
            grid=(n_cb, B, n_t),
            in_specs=[
                pl.BlockSpec((pl.Squeezed(), pl.Squeezed(), D, tile_t),
                             lambda i, b, t: (b, i, 0, t)),
                pl.BlockSpec((pl.Squeezed(), V, D + 1),
                             lambda i, b, t: (i, 0, 0)),
            ],
            out_specs=pl.BlockSpec((pl.Squeezed(), pl.Squeezed(), 1, tile_t),
                                   lambda i, b, t: (b, i, 0, t)),
            scratch_shapes=[pltpu.VMEM((D + 1, tile_t), jnp.float32)],
        ),
        compiler_params=pltpu.CompilerParams(
            # n_cb may be small/odd -> 'arbitrary'; v7x megacore splits the
            # large batch/time-tile axes instead (v5e/v6e are single-TC).
            dimension_semantics=("arbitrary", "parallel", "parallel"),
            vmem_limit_bytes=vmem_limit,
        ),
        cost_estimate=cost,
    )(z, cb_aug)

    # (B, n_cb, 1, T_pad) -> drop unit dim, slice off T padding -> (B, n_cb, T)
    return out[:, :, 0, :T]


def extract_codes_ref(quantized_z, codebooks):
    """Pure-JAX reference mirroring the torch forward."""
    B, F, T = quantized_z.shape
    n_cb, V, D = codebooks.shape
    z = quantized_z.reshape(B, n_cb, D, T)
    codes = []
    for i in range(n_cb):
        z_book = z[:, i, :, :]                                    # (B, D, T)
        z_flat = jnp.transpose(z_book, (0, 2, 1)).reshape(-1, D)  # (B*T, D)
        d2 = jnp.sum((z_flat[:, None, :] - codebooks[i][None, :, :]) ** 2, axis=-1)
        codes.append(jnp.argmin(d2, axis=1).reshape(B, T))
    return jnp.stack(codes, axis=1).astype(jnp.int32)


if __name__ == "__main__":
    key = jax.random.PRNGKey(0)
    k1, k2, k3, k4, k5, k6 = jax.random.split(key, 6)

    # Small test (single tile, T padded 16 -> 128).
    B, n_cb, D, T, V = 2, 4, 8, 16, 64
    codebooks = jax.random.normal(k1, (n_cb, V, D), dtype=jnp.float32)
    quantized_z = jax.random.normal(k2, (B, n_cb * D, T), dtype=jnp.float32)
    codes = jax.block_until_ready(extract_codes(quantized_z, codebooks))
    ref = extract_codes_ref(quantized_z, codebooks)
    assert codes.shape == (B, n_cb, T), codes.shape
    assert bool(jnp.all(codes == ref)), "mismatch vs reference (small)"

    # Multi-tile + ragged-padding test (T=192, tile_t forced to 128 -> 2 tiles, pad to 256).
    B2, T2 = 2, 192
    codebooks2 = jax.random.normal(k3, (n_cb, V, D), dtype=jnp.float32)
    quantized_z2 = jax.random.normal(k4, (B2, n_cb * D, T2), dtype=jnp.float32)
    codes2 = jax.block_until_ready(extract_codes(quantized_z2, codebooks2, tile_t=128))
    ref2 = extract_codes_ref(quantized_z2, codebooks2)
    assert codes2.shape == (B2, n_cb, T2), codes2.shape
    assert bool(jnp.all(codes2 == ref2)), "mismatch vs reference (multi-tile)"

    # Large-vocab test exercising the chunked streaming arg-max (V=1024 -> 2 chunks of 512).
    B3, n_cb3, T3, V3 = 1, 2, 160, 1024
    codebooks3 = jax.random.normal(k5, (n_cb3, V3, D), dtype=jnp.float32)
    quantized_z3 = jax.random.normal(k6, (B3, n_cb3 * D, T3), dtype=jnp.float32)
    codes3 = jax.block_until_ready(extract_codes(quantized_z3, codebooks3))
    ref3 = extract_codes_ref(quantized_z3, codebooks3)
    assert codes3.shape == (B3, n_cb3, T3), codes3.shape
    assert bool(jnp.all(codes3 == ref3)), "mismatch vs reference (large vocab)"

    print("KERNEL_OK")
</pallas_src>

<mosaic_0001>
module attributes {stable_mosaic.version = 11 : i64} {
  func.func @_nearest_code_kernel(%arg0: i32, %arg1: i32, %arg2: i32, %arg3: memref<1x1x8x128xf32, #tpu.memory_space<vmem>>, %arg4: memref<1x64x9xf32, #tpu.memory_space<vmem>>, %arg5: memref<1x1x1x128xi32, #tpu.memory_space<vmem>>, %arg6: memref<9x128xf32, #tpu.memory_space<vmem>>) attributes {dimension_semantics = [#tpu.dimension_semantics<arbitrary>, #tpu.dimension_semantics<parallel>, #tpu.dimension_semantics<parallel>], iteration_bounds = array<i64: 4, 2, 1>, scalar_prefetch = 0 : i64, scratch_operands = 1 : i64, tpu.core_type = #tpu.core_type<tc>, window_params = [{transform_indices = @transform_0, window_bounds = array<i64: 1, 1, 8, 128>}, {transform_indices = @transform_1, window_bounds = array<i64: 1, 64, 9>}, {transform_indices = @transform_2, window_bounds = array<i64: 1, 1, 1, 128>}]} {
    %c0 = arith.constant 0 : index
    %c0_0 = arith.constant 0 : index
    %c0_1 = arith.constant 0 : index
    %c0_2 = arith.constant 0 : index
    %0 = vector.load %arg3[%c0, %c0_0, %c0_1, %c0_2] : memref<1x1x8x128xf32, #tpu.memory_space<vmem>>, vector<1x1x8x128xf32>
    %1 = vector.shape_cast %0 : vector<1x1x8x128xf32> to vector<8x128xf32>
    %c0_3 = arith.constant 0 : index
    %c0_4 = arith.constant 0 : index
    %2 = vector.load %arg6[%c0_3, %c0_4] : memref<9x128xf32, #tpu.memory_space<vmem>>, vector<8x128xf32>
    tpu.vector_store %arg6[%c0_3, %c0_4], %1 {strides = array<i32>} : memref<9x128xf32, #tpu.memory_space<vmem>>, vector<8x128xf32>,
    %cst = arith.constant 1.000000e+00 : f32
    %3 = vector.broadcast %cst : f32 to vector<1x128xf32>
    %c8 = arith.constant 8 : index
    %c0_5 = arith.constant 0 : index
    %4 = vector.load %arg6[%c8, %c0_5] : memref<9x128xf32, #tpu.memory_space<vmem>>, vector<1x128xf32>
    tpu.vector_store %arg6[%c8, %c0_5], %3 {strides = array<i32>} : memref<9x128xf32, #tpu.memory_space<vmem>>, vector<1x128xf32>,
    %c0_6 = arith.constant 0 : index
    %c0_7 = arith.constant 0 : index
    %5 = vector.load %arg6[%c0_6, %c0_7] : memref<9x128xf32, #tpu.memory_space<vmem>>, vector<9x128xf32>
    %c0_8 = arith.constant 0 : index
    %c0_9 = arith.constant 0 : index
    %c0_10 = arith.constant 0 : index
    %6 = vector.load %arg4[%c0_8, %c0_9, %c0_10] : memref<1x64x9xf32, #tpu.memory_space<vmem>>, vector<1x64x9xf32>
    %7 = vector.shape_cast %6 : vector<1x64x9xf32> to vector<64x9xf32>
    %cst_11 = arith.constant dense<0.000000e+00> : vector<64x128xf32>
    %8 = tpu.matmul %7, %5, %cst_11 {dimension_numbers = #tpu.dot_dimension_numbers<[1], [0], [0], [1], [0, 0, 1, 1], [], []>} : vector<64x9xf32>, vector<9x128xf32>, vector<64x128xf32> -> vector<64x128xf32>
    %cst_12 = arith.constant dense<0xFF800000> : vector<128xf32>
    %9 = vector.multi_reduction <maximumf>, %8, %cst_12 [0] : vector<64x128xf32> to vector<128xf32>
    %10 = vector.shape_cast %9 : vector<128xf32> to vector<1x128xf32>
    %11 = tpu.iota {dimensions = array<i32: 0>} : vector<64x1xi32>
    %c0_i32 = arith.constant 0 : i32
    %12 = vector.broadcast %c0_i32 : i32 to vector<64x1xi32>
    %13 = arith.addi %11, %12 : vector<64x1xi32>
    %14 = vector.broadcast %10 : vector<1x128xf32> to vector<64x128xf32>
    %15 = arith.cmpf oge, %8, %14 : vector<64x128xf32>
    %c64_i32 = arith.constant 64 : i32
    %16 = vector.shape_cast %13 : vector<64x1xi32> to vector<64x1xi32>
    %17 = vector.broadcast %16 : vector<64x1xi32> to vector<64x128xi32>
    %18 = vector.broadcast %c64_i32 : i32 to vector<64x128xi32>
    %19 = arith.select %15, %17, %18 : vector<64x128xi1>, vector<64x128xi32>
    %cst_13 = arith.constant dense<2147483647> : vector<128xi32>
    %20 = vector.multi_reduction <minsi>, %19, %cst_13 [0] : vector<64x128xi32> to vector<128xi32>
    %21 = vector.shape_cast %20 : vector<128xi32> to vector<1x128xi32>
    %c0_14 = arith.constant 0 : index
    %c0_15 = arith.constant 0 : index
    %c0_16 = arith.constant 0 : index
    %c0_17 = arith.constant 0 : index
    %22 = vector.load %arg5[%c0_14, %c0_15, %c0_16, %c0_17] : memref<1x1x1x128xi32, #tpu.memory_space<vmem>>, vector<1x1x1x128xi32>
    %23 = vector.shape_cast %22 : vector<1x1x1x128xi32> to vector<1x128xi32>
    %24 = vector.shape_cast %21 : vector<1x128xi32> to vector<1x1x1x128xi32>
    tpu.vector_store %arg5[%c0_14, %c0_15, %c0_16, %c0_17], %24 {strides = array<i32>} : memref<1x1x1x128xi32, #tpu.memory_space<vmem>>, vector<1x1x1x128xi32>,
    return
  }
  func.func @transform_0(%arg0: i32, %arg1: i32, %arg2: i32) -> (i32, i32, i32, i32) {
    %c0_i32 = arith.constant 0 : i32
    %c0_i32_0 = arith.constant 0 : i32
    return %arg1, %arg0, %c0_i32, %arg2 : i32, i32, i32, i32
  }
  func.func @transform_1(%arg0: i32, %arg1: i32, %arg2: i32) -> (i32, i32, i32) {
    %c0_i32 = arith.constant 0 : i32
    %c0_i32_0 = arith.constant 0 : i32
    %c0_i32_1 = arith.constant 0 : i32
    return %arg0, %c0_i32, %c0_i32_0 : i32, i32, i32
  }
  func.func @transform_2(%arg0: i32, %arg1: i32, %arg2: i32) -> (i32, i32, i32, i32) {
    %c0_i32 = arith.constant 0 : i32
    %c0_i32_0 = arith.constant 0 : i32
    return %arg1, %arg0, %c0_i32, %arg2 : i32, i32, i32, i32
  }
}

</mosaic_0001>

<bundles_post_ra>
// kernel: tpu_custom_call.1
= control target key start
LH: loop header
LB: loop body
LE: loop exit
PB: predicated region body
PF: predicated region fallthrough
CT: control target
= control target key end

     0   :  { %7 = vsyncpa [#allocation4], 0  ;;  %s916_s0 = inlined_call_operand.vmem [shape: f32[2,4,8,128], index: 0, kind: input, shape index: {}]   ;;  %s917_s1 = inlined_call_operand.vmem [shape: f32[4,64,9], index: 1, kind: input, shape index: {}]   ;;  %s918_s2 = inlined_call_operand.hbm [shape: s32[2,4,1,128], index: 2, kind: output, shape index: {}]  }
   0x1   :  { %9 = vsyncpa [#allocation4 + $0x1], 0  ;;  %s768_s9 = smov 0   ;;  %s770_s10 = smov 0  }
   0x2   :  { %s772_s11 = smov 0   ;;  %s774_s12 = smov 0  }
   0x3   :  { %s776_s13 = smov 0   ;;  %s778_s14 = smov 0  }
   0x4   :  { %s780_s15 = smov 0   ;;  %s782_s16 = smov 0  }
   0x5 LB: > { %s524_s17 = sadd.s32 4294967295, %s748_s16   ;;  %s525_s18 = sadd.s32 4294967294, %s748_s16   ;;  %s748_s16 = sphi %s782_s16, %s15_s16   ;;  %s744_s15 = sphi %s780_s15, %s927_s15   ;;  %s740_s14 = sphi %s778_s14, %s926_s14   ;;  %s736_s13 = sphi %s776_s13, %s925_s13   ;;  %s732_s12 = sphi %s774_s12, %s924_s12   ;;  %s728_s11 = sphi %s772_s11, %s923_s11   ;;  %s724_s10 = sphi %s770_s10, %s922_s10   ;;  %s720_s9 = sphi %s768_s9, %s921_s9  }
   0x6   : > { %s30_s19 = sadd.s32 1, %s740_s14  ;;  %s34_s20 = sadd.s32 1, %s744_s15 }
   0x7   : > { %p32_p0 = scmp.ge.s32.totalorder %s30_s19, 2  ;;  %p111_p1 = scmp.ne.s32.totalorder %s728_s11, %s724_s10 }
   0x8   : > { %p112_p2 = scmp.eq.s32.totalorder %s524_s17, 7  ;;  %p117_p5 = scmp.ne.s32.totalorder %s724_s10, %s720_s9 }
   0x9   : > { %s929_s19 = smov (%p32_p0, %s30_s19), 0  ;;  %s931_s20 = smov (!%p32_p0, %s34_s20), %s744_s15 }
   0xa   : > { %s94_s21 = ssub.s32 %s740_s14, %s929_s19  ;;  %p819_p3 = por %p112_p2, %p111_p1 }
   0xb   : > { %p36_p4 = scmp.ge.s32.totalorder %s931_s20, 4  ;;  %p118_p6 = scmp.eq.s32.totalorder %s525_s18, 7 }
   0xc   : > { %p528_p7 = scmp.ge.s32.totalorder %s748_s16, 1  ;;  %p158_p9 = scmp.lt.s32.totalorder %s748_s16, 9 }
   0xd   : > { %s933_s20 = smov (%p36_p4, %s931_s20), 0  ;;  %p828_p8 = por %p118_p6, %p117_p5 }
   0xe   : > { %s95_s24 = ssub.s32 %s744_s15, %s933_s20  ;;  %s101_s25 = sadd.s32 1, %s728_s11 }
   0xf   : > { %s96_s26 = sor.u32 %s95_s24, %s94_s21  ;;  %p159_p10 = pnand %p528_p7, %p158_p9 }
  0x10   : > { %p99_p11 = scmp.eq.s32.totalorder %s96_s26, 0  ;;  %p190_p12 = scmp.lt.s32.totalorder (!%p159_p10), %s732_s12, 1  ;;  %v750_v0 = vmov (!%p159_p10), 1.0   ;;  %vm244_vm0 = vcmask (!%p159_p10), 1040384   ;;  %vm219_vm1 = vcmask (!%p159_p10), 72704   ;;  %vm751_vm2 = vmmov (!%p159_p10), 1  }
  0x11   : > { %162 = sbr.rel (%p159_p10) target bundleno = 309 (0x135), region = 28  ;;  %p192_p13 = scmp.lt.s32.totalorder (!%p159_p10), %s736_s13, 3  ;;  %208 = vst [vmem:[#allocation2 + $0x8] sm:$0x1] (!%p159_p10), %v750_v0  ;;  %vm574_vm3 = vmpackc.low (!%p159_p10), %vm244_vm0, %vm751_vm2  ;;  %v366_v29 = vlaneseq (!%p159_p10) }
  0x12   : > { %s837_s27 = scalar_select %p99_p11, %s728_s11, %s101_s25  }
  0x13   : > { %v367_v32 = vshrl.u32 (!%p159_p10), %v366_v29, 7  ;;  %s188_s24 = sand.u32 (!%p159_p10), 1, %s724_s10   ;;  %s542_s25 = sshll.u32 (!%p159_p10), %s732_s12, 2 }
  0x14   : > { %s427_s26 = sadd.s32 (!%p159_p10), %s736_s13, %s542_s25  ;;  %s752_s6 = smov (!%p159_p10), [#allocation3]  }
  0x15   : > { %v368_v35 = vadd.s32 (!%p159_p10), 8, %v367_v32  ;;  %v369_v36 = vadd.s32 (!%p159_p10), 16, %v367_v32  ;;  %v370_v37 = vadd.s32 (!%p159_p10), 24, %v367_v32  ;;  %v371_v38 = vadd.s32 (!%p159_p10), 32, %v367_v32  ;;  %s658_s7 = sshll.u32 (!%p159_p10), %s752_s6, 4  ;;  %s659_s7 = int_to_ptr.vmem [resolvable:$false] %s658_s7 }
  0x16   : > { %v372_v39 = vadd.s32 (!%p159_p10), 40, %v367_v32  ;;  %v373_v40 = vadd.s32 (!%p159_p10), 48, %v367_v32  ;;  %v374_v41 = vadd.s32 (!%p159_p10), 56, %v367_v32 }
  0x18   : > { %s191_s28 = scalar_select %p190_p12, %s732_s12, 1  ;;  %v210_v4 = vld [vmem:[#allocation2 + $0x8] sm:$0x1] }
  0x19   : > { %s193_s29 = scalar_select %p192_p13, %s736_s13, 3 }
  0x1a   : > { %s529_s30 = sshll.u32 %s191_s28, 2  ;;  %s543_s28 = sshll.u32 %s427_s26, 4 }
  0x1b   : > { %s198_s3 = sadd.s32 %s529_s30, %s193_s29  ;;  %s546_s4 = sshll.u32 %s193_s29, 6 }
  0x1c   : > { %s530_s5 = sshll.u32 %s198_s3, 3  ;;  %s205_s8 = scalar_lea.vmem %s917_s1, %s546_s4 }
  0x1d   : > { %s200_s21 = scalar_lea.vmem %s916_s0, %s530_s5  ;;  %v211_v1 = vld [vmem:[%s205_s8] sm:$0xff]  ;;  %v212_v6 = vld [vmem:[%s205_s8 + $0x8] sm:$0xff]  ;;  %v213_v8 = vld [vmem:[%s205_s8 + $0x10] sm:$0xff]  ;;  %s189_s29 = scalar_lea.vmem [#allocation3], %s188_s24 }
  0x1e   : > { %v215_v2 = vld [vmem:[%s205_s8 + $0x20] sm:$0xff]  ;;  %561 = vmatprep.mubr.msk.f32.mxu0 %vm219_vm1, %v211_v1  ;;  %v216_v7 = vld [vmem:[%s205_s8 + $0x28] sm:$0xff]  ;;  %v217_v9 = vld [vmem:[%s205_s8 + $0x30] sm:$0xff]  ;;  %s431_s30 = sshll.u32 %s189_s29, 4  ;;  %s863_s5 = scalar_lea.hbm %s918_s2, %s543_s28  ;;  %s865_s30 = int_to_ptr.vmem [resolvable:$true] %s431_s30 }
  0x1f   : > { %v206_v3 = vld [vmem:[%s200_s21] sm:$0xff]  ;;  %567 = vmatprep.mubr.msk.f32.mxu1 %vm219_vm1, %v215_v2  ;;  %v214_v10 = vld [vmem:[%s205_s8 + $0x18] sm:$0xff]  ;;  %s416_s12 = scalar_lea.sflag [#allocation4], %s188_s24  ;;  %s654_s13 = scalar_lea.vmem %s865_s30, 16 }
  0x20   : > { %v573_v5 = vpack.c.bf16 %v210_v4, %v206_v3  ;;  %v218_v11 = vld [vmem:[%s205_s8 + $0x38] sm:$0xff]  ;;  %p655_p0 = scmp.ne.s32.totalorder %s865_s30, %s654_s13  ;;  %s660_s8 = scalar_lea.vmem %s659_s7, 32 }
  0x21   : > { %p661_p4 = scmp.lt.s32.totalorder %s865_s30, %s659_s7  ;;  %p662_p5 = scmp.lt.s32.totalorder %s660_s8, %s654_s13 }
  0x22   : > { %575 = vmatprep.subr.msk.bf16.mxu0 %vm574_vm3, %v573_v5  ;;  %579 = vmatprep.subr.msk.bf16.mxu1 %vm574_vm3, %v573_v5  ;;  %p656_p1 = pnand %p655_p0, %p819_p3 }
  0x23   : > { %578 = vmatpush3.bf16.msk.msra.mxu0 %vm574_vm3, %v573_v5  ;;  %580 = vmatpush3.bf16.msk.msra.mxu1 %vm574_vm3, %v573_v5  ;;  %p663_p6 = por %p662_p5, %p661_p4 }
  0x24   : > { %p657_p2 = pneg %p656_p1 }
  0x26   : > { %562 = vmatmul.mubr.msk.f32.vlgmr.msra.gmra.mrb[0].mxu0 %vm219_vm1, %v212_v6  ;;  %568 = vmatmul.mubr.msk.f32.vlgmr.msra.gmra.mrb[0].mxu1 %vm219_vm1, %v216_v7  ;;  %p664_p7 = pnand %p663_p6, %p657_p2 }
  0x27   : > { %564 = vmatprep.mubr.msk.f32.mxu0 %vm219_vm1, %v213_v8  ;;  %570 = vmatprep.mubr.msk.f32.mxu1 %vm219_vm1, %v217_v9 }
  0x2a   : > { %565 = vmatmul.mubr.msk.f32.gmra.mrb[2].mxu0 %vm219_vm1, %v214_v10  ;;  %571 = vmatmul.mubr.msk.f32.gmra.mrb[2].mxu1 %vm219_vm1, %v218_v11 }
  0xf9   : > { %v563_v12 = vpop.f32.mrb[0].mxu0  ;;  %v569_v13 = vpop.f32.mrb[0].mxu1 }
  0xfa   : > { %v354_v14 = vmax.f32 %v563_v12, %v569_v13  ;;  %v314_v15 = vpop.f32.mrb[1].mxu0  ;;  %v334_v16 = vpop.f32.mrb[1].mxu1 }
  0xfb   : > { %v353_v17 = vmax.f32 %v314_v15, %v334_v16 }
  0xfd   : > { %v357_v18 = vmax.f32 %v353_v17, %v354_v14  ;;  %v566_v19 = vpop.f32.mrb[2].mxu0  ;;  %v572_v20 = vpop.f32.mrb[2].mxu1 }
  0xfe   : > { %v356_v21 = vmax.f32 %v566_v19, %v572_v20  ;;  %v324_v22 = vpop.f32.mrb[3].mxu0  ;;  %v344_v23 = vpop.f32.mrb[3].mxu1 }
  0xff   : > { %v355_v24 = vmax.f32 %v324_v22, %v344_v23 }
 0x101   : > { %v358_v25 = vmax.f32 %v355_v24, %v356_v21 }
 0x103   : > { %v359_v26 = vmax.f32 %v357_v18, %v358_v25 }
 0x105   : > { %v360_v27 = vrot.slane %v359_v26, 4 }
 0x107   : > { %v361_v28 = vmax.f32 %v359_v26, %v360_v27 }
 0x109   : > { %v362_v30 = vrot.slane %v361_v28, 2 }
 0x10b   : > { %v363_v31 = vmax.f32 %v361_v28, %v362_v30 }
 0x10d   : > { %v364_v33 = vrot.slane %v363_v31, 1 }
 0x10f   : > { %v365_v34 = vmax.f32 %v363_v31, %v364_v33 }
 0x111   : > { %vm375_vm4 = vcmp.ge.f32.partialorder %v314_v15, %v365_v34  ;;  %vm376_vm5 = vcmp.ge.f32.partialorder %v563_v12, %v365_v34  ;;  %vm377_vm6 = vcmp.ge.f32.partialorder %v324_v22, %v365_v34  ;;  %vm378_vm7 = vcmp.ge.f32.partialorder %v566_v19, %v365_v34 }
 0x112   : > { %vm379_vm8 = vcmp.ge.f32.partialorder %v334_v16, %v365_v34  ;;  %vm380_vm9 = vcmp.ge.f32.partialorder %v569_v13, %v365_v34  ;;  %vm381_vm10 = vcmp.ge.f32.partialorder %v344_v23, %v365_v34  ;;  %vm382_vm11 = vcmp.ge.f32.partialorder %v572_v20, %v365_v34 }
 0x113   : > { %v383_v42 = vsel %vm375_vm4, %v367_v32, 64  ;;  %v384_v43 = vsel %vm376_vm5, %v368_v35, 64  ;;  %v385_v44 = vsel %vm377_vm6, %v369_v36, 64  ;;  %v386_v45 = vsel %vm378_vm7, %v370_v37, 64 }
 0x114   : > { %v387_v46 = vsel %vm379_vm8, %v371_v38, 64  ;;  %v388_v47 = vsel %vm380_vm9, %v372_v39, 64  ;;  %v389_v48 = vsel %vm381_vm10, %v373_v40, 64  ;;  %v390_v49 = vsel %vm382_vm11, %v374_v41, 64 }
 0x115   : > { %vm391_vm12 = vcmp.lt.s32.totalorder %v383_v42, %v387_v46  ;;  %vm393_vm13 = vcmp.lt.s32.totalorder %v384_v43, %v388_v47  ;;  %vm395_vm14 = vcmp.lt.s32.totalorder %v385_v44, %v389_v48  ;;  %vm397_vm15 = vcmp.lt.s32.totalorder %v386_v45, %v390_v49 }
 0x116   : > { %v392_v50 = vsel %vm391_vm12, %v383_v42, %v387_v46  ;;  %v394_v51 = vsel %vm393_vm13, %v384_v43, %v388_v47  ;;  %v396_v52 = vsel %vm395_vm14, %v385_v44, %v389_v48  ;;  %v398_v53 = vsel %vm397_vm15, %v386_v45, %v390_v49 }
 0x117   : > { %vm399_vm0 = vcmp.lt.s32.totalorder %v392_v50, %v394_v51  ;;  %vm401_vm1 = vcmp.lt.s32.totalorder %v396_v52, %v398_v53 }
 0x118   : > { %v400_v54 = vsel %vm399_vm0, %v392_v50, %v394_v51  ;;  %v402_v55 = vsel %vm401_vm1, %v396_v52, %v398_v53 }
 0x119   : > { %vm403_vm2 = vcmp.lt.s32.totalorder %v400_v54, %v402_v55 }
 0x11a   : > { %v404_v56 = vsel %vm403_vm2, %v400_v54, %v402_v55 }
 0x11b   : > { %v405_v57 = vrot.slane %v404_v56, 4 }
 0x11d   : > { %vm406_vm3 = vcmp.lt.s32.totalorder %v404_v56, %v405_v57 }
 0x11e   : > { %v407_v58 = vsel %vm406_vm3, %v404_v56, %v405_v57 }
 0x11f   : > { %v408_v59 = vrot.slane %v407_v58, 2 }
 0x121   : > { %vm409_vm4 = vcmp.lt.s32.totalorder %v407_v58, %v408_v59 }
 0x122   : > { %v410_v60 = vsel %vm409_vm4, %v407_v58, %v408_v59 }
 0x123   : > { %v411_v61 = vrot.slane %v410_v60, 1 }
 0x125   : > { %vm412_vm5 = vcmp.lt.s32.totalorder %v410_v60, %v411_v61 }
 0x126   : > { %v413_v62 = vsel %vm412_vm5, %v410_v60, %v411_v61 }
 0x127   : > { %414 = vst [vmem:[%s189_s29] sm:$0x1] %v413_v62 }
 0x128   : > { %667 = shalt.err (!%p664_p7)
}
 0x129   : > { %s668_s17 = scalar_lea.hbm %s863_s5, 16  ;;  %s672_s24 = scalar_lea.hbm %s918_s2, 128 }
 0x12a   : > { %p669_p9 = scmp.ne.s32.totalorder %s863_s5, %s668_s17  ;;  %p673_p12 = scmp.lt.u32.totalorder %s863_s5, %s918_s2 }
 0x12b   : > { %p674_p13 = scmp.lt.u32.totalorder %s672_s24, %s668_s17  ;;  %p676_p1 = scmp.lt.u32.totalorder %s668_s17, %s863_s5 }
 0x12c   : > { %p670_p10 = pnand %p669_p9, %p819_p3 }
 0x12d   : > { %p675_p0 = por %p674_p13, %p673_p12 }
 0x12e   : > { %p671_p11 = pneg %p670_p10 }
 0x12f   : > { %p677_p2 = por %p676_p1, %p675_p0 }
 0x131   : > { %p678_p4 = pnand %p677_p2, %p671_p11 }
 0x133   : > { %681 = shalt.err (!%p678_p4)
}
 0x134   : > { %581 = dma.vmem_to_hbm [thread:$0]  (%p819_p3), %s865_s30, 16, %s863_s5, %s416_s12  }
 0x135 PF: > { %p587_p5 = scmp.ge.s32.totalorder %s748_s16, 2  ;;  %s443_s28 = sand.u32 1, %s720_s9  }
 0x136   : > { %s444_s29 = scalar_lea.sflag [#allocation4], %s443_s28 }
 0x137   : > { %p584_p6 = pnand %p587_p5, %p828_p8 }
 0x139   : > { %715 = dma.done.wait (!%p584_p6), %s444_s29, 16  }
 0x13a   : > { %717 = vsyncadd (!%p584_p6), %s444_s29, 4294967280  ;;  %s15_s16 = sadd.s32 1, %s748_s16   ;;  %s921_s9 = smov %s724_s10 }
 0x13b   : > { %p12_p7 = scmp.ge.s32.totalorder %s15_s16, 10   ;;  %s922_s10 = smov %s728_s11 }
 0x13c   : > { %s923_s11 = smov %s837_s27  ;;  %s924_s12 = smov %s740_s14 }
 0x13d   : > { %s925_s13 = smov %s744_s15  ;;  %s926_s14 = smov %s929_s19 }
 0x13e   : > { %s927_s15 = smov %s933_s20  ;;  %14 = sbr.rel (!%p12_p7) target bundleno = 5 (0x5), region = 66 }
 0x145   :  { %448 = vsyncpa [#allocation4], 1 }
 0x146   :  { %450 = vsyncpa [#allocation4 + $0x1], 1 }

</bundles_post_ra>
